<compile_context>
chip_gen: v5e
topology: v5e:2x2
jax: 0.10.0
libtpu: 0.0.40
codegen_flags: <defaults>
</compile_context>

<pallas_src>
import math
import numpy as np
import jax
import jax.numpy as jnp
from jax.experimental import pallas as pl
from jax.experimental.pallas import tpu as pltpu


# ---------------------------------------------------------------------------
# Host-side matrix builders (numpy, trace-time only)
# ---------------------------------------------------------------------------

def pool_matrix_np(in_size, k):
    """AvgPool1d(k, stride=k) as an (out, in) matrix. Assumes in_size % k == 0."""
    out = in_size // k
    m = np.zeros((out, in_size), np.float32)
    for i in range(out):
        m[i, i * k:(i + 1) * k] = 1.0 / k
    return m


def interp_matrix_np(out_size, in_size):
    """1-D linear interpolation weights, align_corners=True (PyTorch semantics)."""
    if in_size == 1:
        return np.ones((out_size, 1), np.float32)
    if out_size == 1:
        m = np.zeros((1, in_size), np.float32)
        m[0, 0] = 1.0
        return m
    src = np.arange(out_size, dtype=np.float64) * (in_size - 1) / (out_size - 1)
    i0 = np.clip(np.floor(src).astype(np.int64), 0, in_size - 2)
    frac = (src - i0).astype(np.float32)
    m = np.zeros((out_size, in_size), np.float32)
    m[np.arange(out_size), i0] = 1.0 - frac
    m[np.arange(out_size), i0 + 1] = frac
    return m


def shift_matrix_np(n, d):
    """S_d[i, j] = 1 iff j == i + d (zero boundary rows == zero padding)."""
    return np.eye(n, n, d, dtype=np.float32)


def conv3x3_fused_T_np(w, Hc, Wc, A_left=None, B_right=None, batch=1):
    """3x3 'same' conv (stride 1, no bias) in TRANSPOSED, dx-fused matrix form.

    Original channel-stacked form (v has shape (Cin*H_in, W_in)):
        out = sum_dx L'[dx] @ v @ R'[dx]
        L'[dx] = (sum_dy kron(w[:, :, dy, dx], S_dy(Hc))) @ A_left   # channel+H mix
        R'[dx] = B_right @ S_dx(Wc)^T                                # W shift (+fold)
    A_left / B_right optionally fold a separable spatial map applied to the conv
    input (stage AvgPool2d, or the need_x2 bilinear resize).

    Transposed (u = v^T per image) and batched (B images stacked along rows):
        Q_dx   = kron(I_B, R'[dx]^T) @ u                 # 3 tiny matmuls
        out^T  = concat([Q_-1, Q_0, Q_1], axis=1) @ vstack([L'[dx]^T])   # 1 wide matmul

    Returns:
        Rk: (3, B*Wc, B*W_in)  stacked kron(I_B, R'[dx]^T)
        LT: (3*Cin*H_in, Cout*Hc)  vstack of L'[dx]^T (same dx order as Rk)
    """
    w = np.asarray(w, np.float32)
    Cout, Cin = w.shape[0], w.shape[1]
    eye_b = np.eye(batch, dtype=np.float32)
    rks, lts = [], []
    for dxi, dx in enumerate((-1, 0, 1)):
        L = np.zeros((Cout * Hc, Cin * Hc), np.float32)
        for dyi, dy in enumerate((-1, 0, 1)):
            L += np.kron(w[:, :, dyi, dxi], shift_matrix_np(Hc, dy))
        if A_left is not None:
            L = L @ A_left                               # (Cout*Hc, Cin*H_in)
        Tt = shift_matrix_np(Wc, dx).T                   # (Wc, Wc)
        R = Tt if B_right is None else (B_right @ Tt)    # (W_in, Wc)
        rks.append(np.kron(eye_b, R.T))                  # (B*Wc, B*W_in)
        lts.append(L.T)                                  # (Cin*H_in, Cout*Hc)
    return np.stack(rks), np.concatenate(lts, axis=0)


# ---------------------------------------------------------------------------
# Fused Pallas kernel
# ---------------------------------------------------------------------------

def _const_index_map(ndim):
    if ndim == 2:
        return lambda n: (0, 0)
    assert ndim == 3
    return lambda n: (0, 0, 0)


def _make_fused_kernel(n_stages, need_fuse):
    bf16 = jnp.bfloat16

    def dotf(a, b):
        # bf16 MXU inputs, f32 accumulation (one MXU pass per matmul).
        return jnp.dot(a.astype(bf16), b.astype(bf16),
                       preferred_element_type=jnp.float32)

    def conv_apply(u, rk_ref, lt_ref):
        # u: (B*W_in, Cin*H_in).  3 tiny W-axis matmuls, lane-concat, then one
        # wide channel-mixing matmul with contraction 3*Cin*H_in.
        u16 = u.astype(bf16)
        q = [jnp.dot(rk_ref[i], u16, preferred_element_type=jnp.float32)
             for i in range(3)]
        q_cat = jnp.concatenate(q, axis=1)               # (B*Wc, 3*Cin*H_in)
        return dotf(q_cat, lt_ref[...])                  # (B*Wc, Cout*Hc)

    def kernel(*refs):
        o_ref = refs[-1]
        it = iter(refs[:-1])
        x_ref = next(it)
        x2_ref = next(it) if need_fuse else None

        resl = x_ref[0]                                  # (B*W, C*H), f32, lane-dense
        y = resl
        for _ in range(n_stages):
            rk = next(it)
            lt = next(it)
            upl = next(it)
            upr = next(it)
            y = conv_apply(y, rk, lt)                    # AvgPool2 folded into conv
            resl = resl + dotf(dotf(upl[...], y), upr[...])   # bilinear up + add
        resl = jnp.maximum(resl, 0.0)                    # ReLU
        rk_s = next(it)
        lt_s = next(it)
        resl = conv_apply(resl, rk_s, lt_s)              # (x2 resize folded) conv_sum
        if need_fuse:
            rk_c = next(it)
            lt_c = next(it)
            resl = conv_apply(resl + x2_ref[0], rk_c, lt_c)   # conv_sum_c
        o_ref[0] = resl.astype(o_ref.dtype)

    return kernel


# ---------------------------------------------------------------------------
# Module (forward-only, deterministic synthetic weights)
# ---------------------------------------------------------------------------

class DeepPoolLayerFirst:
    def __init__(self, k, k_out, need_x2, need_fuse, key):
        self.k = k
        self.k_out = k_out
        self.pools_sizes = [2, 2, 2]
        self.need_x2 = need_x2
        self.need_fuse = need_fuse
        keys = jax.random.split(key, 5)

        def init_conv(kk, cout, cin):
            bound = 1.0 / math.sqrt(cin * 9)   # PyTorch default conv init bound
            return jax.random.uniform(kk, (cout, cin, 3, 3), jnp.float32, -bound, bound)

        self.convs_w = [init_conv(keys[i], k, k) for i in range(3)]
        self.conv_sum_w = init_conv(keys[3], k_out, k)
        self.conv_sum_c_w = init_conv(keys[4], k_out, k_out) if need_fuse else None

    def _build_matrices(self, H, W, B, H2=None, W2=None):
        """All constant matrices (bf16) for the transposed, dx-fused, batched kernel."""
        C, C_out = self.k, self.k_out
        eye_c = np.eye(C, dtype=np.float32)
        eye_b = np.eye(B, dtype=np.float32)
        mats, macs = [], 0
        h, w = H, W
        for i, ps in enumerate(self.pools_sizes):
            ho, wo = h // ps, w // ps
            a_pool = np.kron(eye_c, pool_matrix_np(h, ps))        # (C*ho, C*h)
            bt_pool = pool_matrix_np(w, ps).T                     # (w, wo)
            Rk, LT = conv3x3_fused_T_np(np.asarray(self.convs_w[i]), ho, wo,
                                        A_left=a_pool, B_right=bt_pool, batch=B)
            upL = np.kron(eye_b, interp_matrix_np(W, wo))         # (B*W, B*wo)
            upR = np.kron(eye_c, interp_matrix_np(H, ho)).T       # (C*ho, C*H)
            mats += [Rk, LT, upL, upR]
            macs += 3 * (B * wo) * (B * w) * (C * h)              # Q matmuls
            macs += (B * wo) * (3 * C * h) * (C * ho)             # wide matmul
            macs += (B * W) * (B * wo) * (C * ho) + (B * W) * (C * ho) * (C * H)
            h, w = ho, wo
        if self.need_x2:
            Hs, Ws = H2, W2
            a_x2 = np.kron(eye_c, interp_matrix_np(H2, H))        # resize folded
            bt_x2 = interp_matrix_np(W2, W).T
            Rk_s, LT_s = conv3x3_fused_T_np(np.asarray(self.conv_sum_w), Hs, Ws,
                                            A_left=a_x2, B_right=bt_x2, batch=B)
        else:
            Hs, Ws = H, W
            Rk_s, LT_s = conv3x3_fused_T_np(np.asarray(self.conv_sum_w), Hs, Ws, batch=B)
        mats += [Rk_s, LT_s]
        macs += 3 * (B * Ws) * (B * W) * (C * H) + (B * Ws) * (3 * C * H) * (C_out * Hs)
        if self.need_fuse:
            Rk_c, LT_c = conv3x3_fused_T_np(np.asarray(self.conv_sum_c_w), Hs, Ws, batch=B)
            mats += [Rk_c, LT_c]
            macs += 3 * (B * Ws) * (B * Ws) * (C_out * Hs) \
                    + (B * Ws) * (3 * C_out * Hs) * (C_out * Hs)
        mats = [jnp.asarray(m, dtype=jnp.bfloat16) for m in mats]   # half the VMEM
        return mats, (Hs, Ws), macs

    def __call__(self, x, x2=None, images_per_step=None):
        N, C, H, W = x.shape
        assert C == self.k
        div = 1
        for ps in self.pools_sizes:
            div *= ps
        # Note: PyTorch AvgPool2d(stride=k) silently truncates remainders; this
        # matrix formulation assumes exact divisibility at every pooling level.
        assert H % div == 0 and W % div == 0, "H, W must be divisible by prod(pools_sizes)"

        # Images per grid step: batch work per step (amortize ~600-cycle step
        # overhead on v5e/v6e) but keep >= 2 steps so the "parallel" axis can
        # still shard across v7x's two TensorCores.
        if images_per_step is None:
            B = N // 2 if (N % 2 == 0 and N >= 4) else 1
        else:
            B = images_per_step
        assert N % B == 0
        G = N // B

        H2 = W2 = None
        if self.need_x2:
            H2, W2 = int(x2.shape[2]), int(x2.shape[3])
        mats, (Hs, Ws), macs = self._build_matrices(H, W, B, H2, W2)

        # Transposed (lane-dense) channel-stacked layout, B images stacked along
        # sublanes: block = (B*W, C*H) with the long C*H axis on lanes.
        xt = x.reshape(N, C * H, W).transpose(0, 2, 1).reshape(G, B * W, C * H)
        inputs = [xt]
        in_specs = [pl.BlockSpec((1, B * W, C * H), lambda n: (n, 0, 0))]
        if self.need_fuse:
            C2, Hf, Wf = int(x2.shape[1]), int(x2.shape[2]), int(x2.shape[3])
            assert (Hf, Wf) == (Hs, Ws) and C2 == self.k_out
            x2t = x2.reshape(N, C2 * Hf, Wf).transpose(0, 2, 1).reshape(G, B * Wf, C2 * Hf)
            inputs.append(x2t)
            in_specs.append(pl.BlockSpec((1, B * Wf, C2 * Hf), lambda n: (n, 0, 0)))
        for m in mats:
            inputs.append(m)
            # constant block index -> DMA'd once, reused for every grid step
            in_specs.append(pl.BlockSpec(m.shape, _const_index_map(m.ndim)))

        out_cols = self.k_out * Hs
        kernel = _make_fused_kernel(len(self.pools_sizes), self.need_fuse)

        flops = 2 * macs * G
        bytes_accessed = sum(int(a.size) * a.dtype.itemsize for a in inputs) \
            + N * out_cols * Ws * x.dtype.itemsize

        out = pl.pallas_call(
            kernel,
            out_shape=jax.ShapeDtypeStruct((G, B * Ws, out_cols), x.dtype),
            grid=(G,),
            in_specs=in_specs,
            out_specs=pl.BlockSpec((1, B * Ws, out_cols), lambda n: (n, 0, 0)),
            compiler_params=pltpu.CompilerParams(
                dimension_semantics=("parallel",),     # shard steps across TCs (v7x)
                # Actual usage here is < 1 MiB; raise this when scaling H/W/C/B
                # (keep headroom on v7x's 64 MiB core).
                vmem_limit_bytes=32 * 1024 * 1024,
            ),
            cost_estimate=pl.CostEstimate(flops=int(flops), transcendentals=0,
                                          bytes_accessed=int(bytes_accessed)),
        )(*inputs)
        # Undo the transposed layout.
        return (out.reshape(N, Ws, out_cols)
                   .transpose(0, 2, 1)
                   .reshape(N, self.k_out, Hs, Ws))


# ---------------------------------------------------------------------------
# Pure-JAX reference (f32, HIGHEST precision) for numerical validation
# ---------------------------------------------------------------------------

def ref_forward(layer, x, x2=None):
    hp = jax.lax.Precision.HIGHEST

    def conv(v, w):
        return jax.lax.conv_general_dilated(
            v, w, (1, 1), ((1, 1), (1, 1)),
            dimension_numbers=('NCHW', 'OIHW', 'NCHW'), precision=hp)

    def pool(v, k):
        n, c, h, w = v.shape
        return v.reshape(n, c, h // k, k, w // k, k).mean(axis=(3, 5))

    def up(v, H, W):
        ia = jnp.asarray(interp_matrix_np(H, v.shape[2]))
        ib = jnp.asarray(interp_matrix_np(W, v.shape[3]))
        return jnp.einsum('Hh,nchw,Ww->ncHW', ia, v, ib, precision=hp)

    resl, y = x, x
    for i in range(3):
        y = conv(pool(y, 2), layer.convs_w[i])
        resl = resl + up(y, x.shape[2], x.shape[3])
    resl = jnp.maximum(resl, 0.0)
    if layer.need_x2:
        resl = up(resl, x2.shape[2], x2.shape[3])
    resl = conv(resl, layer.conv_sum_w)
    if layer.need_fuse:
        resl = conv(resl + x2, layer.conv_sum_c_w)
    return resl


# ---------------------------------------------------------------------------

if __name__ == "__main__":
    key = jax.random.PRNGKey(0)
    k_x, k_x2, k_p = jax.random.split(key, 3)

    N, C, H, W = 2, 4, 16, 16
    k_ch, k_out = 4, 4

    x = jax.random.normal(k_x, (N, C, H, W), jnp.float32)
    x2 = jax.random.normal(k_x2, (N, k_out, H, W), jnp.float32)

    layer = DeepPoolLayerFirst(k_ch, k_out, need_x2=False, need_fuse=True, key=k_p)

    out = jax.block_until_ready(layer(x, x2))

    ref = ref_forward(layer, x, x2)
    assert out.shape == (N, k_out, H, W), out.shape
    assert bool(jnp.all(jnp.isfinite(out)))
    max_err = float(jnp.max(jnp.abs(out - ref)))
    # Tolerance reflects single-pass bf16 MXU inputs (per perf review) vs the
    # f32/HIGHEST reference; typical max abs error observed is ~1e-2.
    assert jnp.allclose(out, ref, rtol=3e-2, atol=3e-2), f"max abs err = {max_err}"

    print("KERNEL_OK")
</pallas_src>

<mosaic_0001>
module attributes {stable_mosaic.version = 11 : i64} {
  func.func @kernel(%arg0: i32, %arg1: memref<1x16x64xf32, #tpu.memory_space<vmem>>, %arg2: memref<1x16x64xf32, #tpu.memory_space<vmem>>, %arg3: memref<3x8x16xbf16, #tpu.memory_space<vmem>>, %arg4: memref<192x32xbf16, #tpu.memory_space<vmem>>, %arg5: memref<16x8xbf16, #tpu.memory_space<vmem>>, %arg6: memref<32x64xbf16, #tpu.memory_space<vmem>>, %arg7: memref<3x4x8xbf16, #tpu.memory_space<vmem>>, %arg8: memref<96x16xbf16, #tpu.memory_space<vmem>>, %arg9: memref<16x4xbf16, #tpu.memory_space<vmem>>, %arg10: memref<16x64xbf16, #tpu.memory_space<vmem>>, %arg11: memref<3x2x4xbf16, #tpu.memory_space<vmem>>, %arg12: memref<48x8xbf16, #tpu.memory_space<vmem>>, %arg13: memref<16x2xbf16, #tpu.memory_space<vmem>>, %arg14: memref<8x64xbf16, #tpu.memory_space<vmem>>, %arg15: memref<3x16x16xbf16, #tpu.memory_space<vmem>>, %arg16: memref<192x64xbf16, #tpu.memory_space<vmem>>, %arg17: memref<3x16x16xbf16, #tpu.memory_space<vmem>>, %arg18: memref<192x64xbf16, #tpu.memory_space<vmem>>, %arg19: memref<1x16x64xf32, #tpu.memory_space<vmem>>) attributes {dimension_semantics = [#tpu.dimension_semantics<parallel>], iteration_bounds = array<i64: 2>, scalar_prefetch = 0 : i64, scratch_operands = 0 : i64, tpu.core_type = #tpu.core_type<tc>, window_params = [{transform_indices = @transform_0, window_bounds = array<i64: 1, 16, 64>}, {transform_indices = @transform_1, window_bounds = array<i64: 1, 16, 64>}, {pipeline_mode = #tpu.pipeline_mode<synchronous>, transform_indices = @transform_2, window_bounds = array<i64: 3, 8, 16>}, {pipeline_mode = #tpu.pipeline_mode<synchronous>, transform_indices = @transform_3, window_bounds = array<i64: 192, 32>}, {pipeline_mode = #tpu.pipeline_mode<synchronous>, transform_indices = @transform_4, window_bounds = array<i64: 16, 8>}, {pipeline_mode = #tpu.pipeline_mode<synchronous>, transform_indices = @transform_5, window_bounds = array<i64: 32, 64>}, {pipeline_mode = #tpu.pipeline_mode<synchronous>, transform_indices = @transform_6, window_bounds = array<i64: 3, 4, 8>}, {pipeline_mode = #tpu.pipeline_mode<synchronous>, transform_indices = @transform_7, window_bounds = array<i64: 96, 16>}, {pipeline_mode = #tpu.pipeline_mode<synchronous>, transform_indices = @transform_8, window_bounds = array<i64: 16, 4>}, {pipeline_mode = #tpu.pipeline_mode<synchronous>, transform_indices = @transform_9, window_bounds = array<i64: 16, 64>}, {pipeline_mode = #tpu.pipeline_mode<synchronous>, transform_indices = @transform_10, window_bounds = array<i64: 3, 2, 4>}, {pipeline_mode = #tpu.pipeline_mode<synchronous>, transform_indices = @transform_11, window_bounds = array<i64: 48, 8>}, {pipeline_mode = #tpu.pipeline_mode<synchronous>, transform_indices = @transform_12, window_bounds = array<i64: 16, 2>}, {pipeline_mode = #tpu.pipeline_mode<synchronous>, transform_indices = @transform_13, window_bounds = array<i64: 8, 64>}, {pipeline_mode = #tpu.pipeline_mode<synchronous>, transform_indices = @transform_14, window_bounds = array<i64: 3, 16, 16>}, {pipeline_mode = #tpu.pipeline_mode<synchronous>, transform_indices = @transform_15, window_bounds = array<i64: 192, 64>}, {pipeline_mode = #tpu.pipeline_mode<synchronous>, transform_indices = @transform_16, window_bounds = array<i64: 3, 16, 16>}, {pipeline_mode = #tpu.pipeline_mode<synchronous>, transform_indices = @transform_17, window_bounds = array<i64: 192, 64>}, {transform_indices = @transform_18, window_bounds = array<i64: 1, 16, 64>}]} {
    %c0 = arith.constant 0 : index
    %c0_0 = arith.constant 0 : index
    %c0_1 = arith.constant 0 : index
    %0 = vector.load %arg1[%c0, %c0_0, %c0_1] : memref<1x16x64xf32, #tpu.memory_space<vmem>>, vector<1x16x64xf32>
    %1 = vector.shape_cast %0 : vector<1x16x64xf32> to vector<16x64xf32>
    %2 = arith.truncf %1 : vector<16x64xf32> to vector<16x64xbf16>
    %c0_2 = arith.constant 0 : index
    %c0_3 = arith.constant 0 : index
    %c0_4 = arith.constant 0 : index
    %3 = vector.load %arg3[%c0_2, %c0_3, %c0_4] : memref<3x8x16xbf16, #tpu.memory_space<vmem>>, vector<1x8x16xbf16>
    %4 = vector.shape_cast %3 : vector<1x8x16xbf16> to vector<8x16xbf16>
    %cst = arith.constant dense<0.000000e+00> : vector<8x64xf32>
    %5 = tpu.matmul %4, %2, %cst {dimension_numbers = #tpu.dot_dimension_numbers<[1], [0], [0], [1], [0, 0, 1, 1], [], []>} : vector<8x16xbf16>, vector<16x64xbf16>, vector<8x64xf32> -> vector<8x64xf32>
    %c1 = arith.constant 1 : index
    %c0_5 = arith.constant 0 : index
    %c0_6 = arith.constant 0 : index
    %6 = vector.load %arg3[%c1, %c0_5, %c0_6] : memref<3x8x16xbf16, #tpu.memory_space<vmem>>, vector<1x8x16xbf16>
    %7 = vector.shape_cast %6 : vector<1x8x16xbf16> to vector<8x16xbf16>
    %cst_7 = arith.constant dense<0.000000e+00> : vector<8x64xf32>
    %8 = tpu.matmul %7, %2, %cst_7 {dimension_numbers = #tpu.dot_dimension_numbers<[1], [0], [0], [1], [0, 0, 1, 1], [], []>} : vector<8x16xbf16>, vector<16x64xbf16>, vector<8x64xf32> -> vector<8x64xf32>
    %c2 = arith.constant 2 : index
    %c0_8 = arith.constant 0 : index
    %c0_9 = arith.constant 0 : index
    %9 = vector.load %arg3[%c2, %c0_8, %c0_9] : memref<3x8x16xbf16, #tpu.memory_space<vmem>>, vector<1x8x16xbf16>
    %10 = vector.shape_cast %9 : vector<1x8x16xbf16> to vector<8x16xbf16>
    %cst_10 = arith.constant dense<0.000000e+00> : vector<8x64xf32>
    %11 = tpu.matmul %10, %2, %cst_10 {dimension_numbers = #tpu.dot_dimension_numbers<[1], [0], [0], [1], [0, 0, 1, 1], [], []>} : vector<8x16xbf16>, vector<16x64xbf16>, vector<8x64xf32> -> vector<8x64xf32>
    %12 = tpu.concatenate %5, %8, %11 in 1 : vector<8x64xf32>, vector<8x64xf32>, vector<8x64xf32> -> vector<8x192xf32>
    %c0_11 = arith.constant 0 : index
    %c0_12 = arith.constant 0 : index
    %13 = vector.load %arg4[%c0_11, %c0_12] : memref<192x32xbf16, #tpu.memory_space<vmem>>, vector<192x32xbf16>
    %14 = arith.truncf %12 : vector<8x192xf32> to vector<8x192xbf16>
    %cst_13 = arith.constant dense<0.000000e+00> : vector<8x32xf32>
    %15 = tpu.matmul %14, %13, %cst_13 {dimension_numbers = #tpu.dot_dimension_numbers<[1], [0], [0], [1], [0, 0, 1, 1], [], []>} : vector<8x192xbf16>, vector<192x32xbf16>, vector<8x32xf32> -> vector<8x32xf32>
    %c0_14 = arith.constant 0 : index
    %c0_15 = arith.constant 0 : index
    %16 = vector.load %arg5[%c0_14, %c0_15] : memref<16x8xbf16, #tpu.memory_space<vmem>>, vector<16x8xbf16>
    %17 = arith.truncf %15 : vector<8x32xf32> to vector<8x32xbf16>
    %cst_16 = arith.constant dense<0.000000e+00> : vector<16x32xf32>
    %18 = tpu.matmul %16, %17, %cst_16 {dimension_numbers = #tpu.dot_dimension_numbers<[1], [0], [0], [1], [0, 0, 1, 1], [], []>} : vector<16x8xbf16>, vector<8x32xbf16>, vector<16x32xf32> -> vector<16x32xf32>
    %c0_17 = arith.constant 0 : index
    %c0_18 = arith.constant 0 : index
    %19 = vector.load %arg6[%c0_17, %c0_18] : memref<32x64xbf16, #tpu.memory_space<vmem>>, vector<32x64xbf16>
    %20 = arith.truncf %18 : vector<16x32xf32> to vector<16x32xbf16>
    %cst_19 = arith.constant dense<0.000000e+00> : vector<16x64xf32>
    %21 = tpu.matmul %20, %19, %cst_19 {dimension_numbers = #tpu.dot_dimension_numbers<[1], [0], [0], [1], [0, 0, 1, 1], [], []>} : vector<16x32xbf16>, vector<32x64xbf16>, vector<16x64xf32> -> vector<16x64xf32>
    %22 = arith.addf %1, %21 : vector<16x64xf32>
    %23 = arith.truncf %15 : vector<8x32xf32> to vector<8x32xbf16>
    %c0_20 = arith.constant 0 : index
    %c0_21 = arith.constant 0 : index
    %c0_22 = arith.constant 0 : index
    %24 = vector.load %arg7[%c0_20, %c0_21, %c0_22] : memref<3x4x8xbf16, #tpu.memory_space<vmem>>, vector<1x4x8xbf16>
    %25 = vector.shape_cast %24 : vector<1x4x8xbf16> to vector<4x8xbf16>
    %cst_23 = arith.constant dense<0.000000e+00> : vector<4x32xf32>
    %26 = tpu.matmul %25, %23, %cst_23 {dimension_numbers = #tpu.dot_dimension_numbers<[1], [0], [0], [1], [0, 0, 1, 1], [], []>} : vector<4x8xbf16>, vector<8x32xbf16>, vector<4x32xf32> -> vector<4x32xf32>
    %c1_24 = arith.constant 1 : index
    %c0_25 = arith.constant 0 : index
    %c0_26 = arith.constant 0 : index
    %27 = vector.load %arg7[%c1_24, %c0_25, %c0_26] : memref<3x4x8xbf16, #tpu.memory_space<vmem>>, vector<1x4x8xbf16>
    %28 = vector.shape_cast %27 : vector<1x4x8xbf16> to vector<4x8xbf16>
    %cst_27 = arith.constant dense<0.000000e+00> : vector<4x32xf32>
    %29 = tpu.matmul %28, %23, %cst_27 {dimension_numbers = #tpu.dot_dimension_numbers<[1], [0], [0], [1], [0, 0, 1, 1], [], []>} : vector<4x8xbf16>, vector<8x32xbf16>, vector<4x32xf32> -> vector<4x32xf32>
    %c2_28 = arith.constant 2 : index
    %c0_29 = arith.constant 0 : index
    %c0_30 = arith.constant 0 : index
    %30 = vector.load %arg7[%c2_28, %c0_29, %c0_30] : memref<3x4x8xbf16, #tpu.memory_space<vmem>>, vector<1x4x8xbf16>
    %31 = vector.shape_cast %30 : vector<1x4x8xbf16> to vector<4x8xbf16>
    %cst_31 = arith.constant dense<0.000000e+00> : vector<4x32xf32>
    %32 = tpu.matmul %31, %23, %cst_31 {dimension_numbers = #tpu.dot_dimension_numbers<[1], [0], [0], [1], [0, 0, 1, 1], [], []>} : vector<4x8xbf16>, vector<8x32xbf16>, vector<4x32xf32> -> vector<4x32xf32>
    %33 = tpu.concatenate %26, %29, %32 in 1 : vector<4x32xf32>, vector<4x32xf32>, vector<4x32xf32> -> vector<4x96xf32>
    %c0_32 = arith.constant 0 : index
    %c0_33 = arith.constant 0 : index
    %34 = vector.load %arg8[%c0_32, %c0_33] : memref<96x16xbf16, #tpu.memory_space<vmem>>, vector<96x16xbf16>
    %35 = arith.truncf %33 : vector<4x96xf32> to vector<4x96xbf16>
    %cst_34 = arith.constant dense<0.000000e+00> : vector<4x16xf32>
    %36 = tpu.matmul %35, %34, %cst_34 {dimension_numbers = #tpu.dot_dimension_numbers<[1], [0], [0], [1], [0, 0, 1, 1], [], []>} : vector<4x96xbf16>, vector<96x16xbf16>, vector<4x16xf32> -> vector<4x16xf32>
    %c0_35 = arith.constant 0 : index
    %c0_36 = arith.constant 0 : index
    %37 = vector.load %arg9[%c0_35, %c0_36] : memref<16x4xbf16, #tpu.memory_space<vmem>>, vector<16x4xbf16>
    %38 = arith.truncf %36 : vector<4x16xf32> to vector<4x16xbf16>
    %cst_37 = arith.constant dense<0.000000e+00> : vector<16x16xf32>
    %39 = tpu.matmul %37, %38, %cst_37 {dimension_numbers = #tpu.dot_dimension_numbers<[1], [0], [0], [1], [0, 0, 1, 1], [], []>} : vector<16x4xbf16>, vector<4x16xbf16>, vector<16x16xf32> -> vector<16x16xf32>
    %c0_38 = arith.constant 0 : index
    %c0_39 = arith.constant 0 : index
    %40 = vector.load %arg10[%c0_38, %c0_39] : memref<16x64xbf16, #tpu.memory_space<vmem>>, vector<16x64xbf16>
    %41 = arith.truncf %39 : vector<16x16xf32> to vector<16x16xbf16>
    %cst_40 = arith.constant dense<0.000000e+00> : vector<16x64xf32>
    %42 = tpu.matmul %41, %40, %cst_40 {dimension_numbers = #tpu.dot_dimension_numbers<[1], [0], [0], [1], [0, 0, 1, 1], [], []>} : vector<16x16xbf16>, vector<16x64xbf16>, vector<16x64xf32> -> vector<16x64xf32>
    %43 = arith.addf %22, %42 : vector<16x64xf32>
    %44 = arith.truncf %36 : vector<4x16xf32> to vector<4x16xbf16>
    %c0_41 = arith.constant 0 : index
    %c0_42 = arith.constant 0 : index
    %c0_43 = arith.constant 0 : index
    %45 = vector.load %arg11[%c0_41, %c0_42, %c0_43] : memref<3x2x4xbf16, #tpu.memory_space<vmem>>, vector<1x2x4xbf16>
    %46 = vector.shape_cast %45 : vector<1x2x4xbf16> to vector<2x4xbf16>
    %cst_44 = arith.constant dense<0.000000e+00> : vector<2x16xf32>
    %47 = tpu.matmul %46, %44, %cst_44 {dimension_numbers = #tpu.dot_dimension_numbers<[1], [0], [0], [1], [0, 0, 1, 1], [], []>} : vector<2x4xbf16>, vector<4x16xbf16>, vector<2x16xf32> -> vector<2x16xf32>
    %c1_45 = arith.constant 1 : index
    %c0_46 = arith.constant 0 : index
    %c0_47 = arith.constant 0 : index
    %48 = vector.load %arg11[%c1_45, %c0_46, %c0_47] : memref<3x2x4xbf16, #tpu.memory_space<vmem>>, vector<1x2x4xbf16>
    %49 = vector.shape_cast %48 : vector<1x2x4xbf16> to vector<2x4xbf16>
    %cst_48 = arith.constant dense<0.000000e+00> : vector<2x16xf32>
    %50 = tpu.matmul %49, %44, %cst_48 {dimension_numbers = #tpu.dot_dimension_numbers<[1], [0], [0], [1], [0, 0, 1, 1], [], []>} : vector<2x4xbf16>, vector<4x16xbf16>, vector<2x16xf32> -> vector<2x16xf32>
    %c2_49 = arith.constant 2 : index
    %c0_50 = arith.constant 0 : index
    %c0_51 = arith.constant 0 : index
    %51 = vector.load %arg11[%c2_49, %c0_50, %c0_51] : memref<3x2x4xbf16, #tpu.memory_space<vmem>>, vector<1x2x4xbf16>
    %52 = vector.shape_cast %51 : vector<1x2x4xbf16> to vector<2x4xbf16>
    %cst_52 = arith.constant dense<0.000000e+00> : vector<2x16xf32>
    %53 = tpu.matmul %52, %44, %cst_52 {dimension_numbers = #tpu.dot_dimension_numbers<[1], [0], [0], [1], [0, 0, 1, 1], [], []>} : vector<2x4xbf16>, vector<4x16xbf16>, vector<2x16xf32> -> vector<2x16xf32>
    %54 = tpu.concatenate %47, %50, %53 in 1 : vector<2x16xf32>, vector<2x16xf32>, vector<2x16xf32> -> vector<2x48xf32>
    %c0_53 = arith.constant 0 : index
    %c0_54 = arith.constant 0 : index
    %55 = vector.load %arg12[%c0_53, %c0_54] : memref<48x8xbf16, #tpu.memory_space<vmem>>, vector<48x8xbf16>
    %56 = arith.truncf %54 : vector<2x48xf32> to vector<2x48xbf16>
    %cst_55 = arith.constant dense<0.000000e+00> : vector<2x8xf32>
    %57 = tpu.matmul %56, %55, %cst_55 {dimension_numbers = #tpu.dot_dimension_numbers<[1], [0], [0], [1], [0, 0, 1, 1], [], []>} : vector<2x48xbf16>, vector<48x8xbf16>, vector<2x8xf32> -> vector<2x8xf32>
    %c0_56 = arith.constant 0 : index
    %c0_57 = arith.constant 0 : index
    %58 = vector.load %arg13[%c0_56, %c0_57] : memref<16x2xbf16, #tpu.memory_space<vmem>>, vector<16x2xbf16>
    %59 = arith.truncf %57 : vector<2x8xf32> to vector<2x8xbf16>
    %cst_58 = arith.constant dense<0.000000e+00> : vector<16x8xf32>
    %60 = tpu.matmul %58, %59, %cst_58 {dimension_numbers = #tpu.dot_dimension_numbers<[1], [0], [0], [1], [0, 0, 1, 1], [], []>} : vector<16x2xbf16>, vector<2x8xbf16>, vector<16x8xf32> -> vector<16x8xf32>
    %c0_59 = arith.constant 0 : index
    %c0_60 = arith.constant 0 : index
    %61 = vector.load %arg14[%c0_59, %c0_60] : memref<8x64xbf16, #tpu.memory_space<vmem>>, vector<8x64xbf16>
    %62 = arith.truncf %60 : vector<16x8xf32> to vector<16x8xbf16>
    %cst_61 = arith.constant dense<0.000000e+00> : vector<16x64xf32>
    %63 = tpu.matmul %62, %61, %cst_61 {dimension_numbers = #tpu.dot_dimension_numbers<[1], [0], [0], [1], [0, 0, 1, 1], [], []>} : vector<16x8xbf16>, vector<8x64xbf16>, vector<16x64xf32> -> vector<16x64xf32>
    %64 = arith.addf %43, %63 : vector<16x64xf32>
    %cst_62 = arith.constant 0.000000e+00 : f32
    %65 = vector.broadcast %cst_62 : f32 to vector<16x64xf32>
    %66 = arith.maximumf %64, %65 : vector<16x64xf32>
    %67 = arith.truncf %66 : vector<16x64xf32> to vector<16x64xbf16>
    %c0_63 = arith.constant 0 : index
    %c0_64 = arith.constant 0 : index
    %c0_65 = arith.constant 0 : index
    %68 = vector.load %arg15[%c0_63, %c0_64, %c0_65] : memref<3x16x16xbf16, #tpu.memory_space<vmem>>, vector<1x16x16xbf16>
    %69 = vector.shape_cast %68 : vector<1x16x16xbf16> to vector<16x16xbf16>
    %cst_66 = arith.constant dense<0.000000e+00> : vector<16x64xf32>
    %70 = tpu.matmul %69, %67, %cst_66 {dimension_numbers = #tpu.dot_dimension_numbers<[1], [0], [0], [1], [0, 0, 1, 1], [], []>} : vector<16x16xbf16>, vector<16x64xbf16>, vector<16x64xf32> -> vector<16x64xf32>
    %c1_67 = arith.constant 1 : index
    %c0_68 = arith.constant 0 : index
    %c0_69 = arith.constant 0 : index
    %71 = vector.load %arg15[%c1_67, %c0_68, %c0_69] : memref<3x16x16xbf16, #tpu.memory_space<vmem>>, vector<1x16x16xbf16>
    %72 = vector.shape_cast %71 : vector<1x16x16xbf16> to vector<16x16xbf16>
    %cst_70 = arith.constant dense<0.000000e+00> : vector<16x64xf32>
    %73 = tpu.matmul %72, %67, %cst_70 {dimension_numbers = #tpu.dot_dimension_numbers<[1], [0], [0], [1], [0, 0, 1, 1], [], []>} : vector<16x16xbf16>, vector<16x64xbf16>, vector<16x64xf32> -> vector<16x64xf32>
    %c2_71 = arith.constant 2 : index
    %c0_72 = arith.constant 0 : index
    %c0_73 = arith.constant 0 : index
    %74 = vector.load %arg15[%c2_71, %c0_72, %c0_73] : memref<3x16x16xbf16, #tpu.memory_space<vmem>>, vector<1x16x16xbf16>
    %75 = vector.shape_cast %74 : vector<1x16x16xbf16> to vector<16x16xbf16>
    %cst_74 = arith.constant dense<0.000000e+00> : vector<16x64xf32>
    %76 = tpu.matmul %75, %67, %cst_74 {dimension_numbers = #tpu.dot_dimension_numbers<[1], [0], [0], [1], [0, 0, 1, 1], [], []>} : vector<16x16xbf16>, vector<16x64xbf16>, vector<16x64xf32> -> vector<16x64xf32>
    %77 = tpu.concatenate %70, %73, %76 in 1 : vector<16x64xf32>, vector<16x64xf32>, vector<16x64xf32> -> vector<16x192xf32>
    %c0_75 = arith.constant 0 : index
    %c0_76 = arith.constant 0 : index
    %78 = vector.load %arg16[%c0_75, %c0_76] : memref<192x64xbf16, #tpu.memory_space<vmem>>, vector<192x64xbf16>
    %79 = arith.truncf %77 : vector<16x192xf32> to vector<16x192xbf16>
    %cst_77 = arith.constant dense<0.000000e+00> : vector<16x64xf32>
    %80 = tpu.matmul %79, %78, %cst_77 {dimension_numbers = #tpu.dot_dimension_numbers<[1], [0], [0], [1], [0, 0, 1, 1], [], []>} : vector<16x192xbf16>, vector<192x64xbf16>, vector<16x64xf32> -> vector<16x64xf32>
    %c0_78 = arith.constant 0 : index
    %c0_79 = arith.constant 0 : index
    %c0_80 = arith.constant 0 : index
    %81 = vector.load %arg2[%c0_78, %c0_79, %c0_80] : memref<1x16x64xf32, #tpu.memory_space<vmem>>, vector<1x16x64xf32>
    %82 = vector.shape_cast %81 : vector<1x16x64xf32> to vector<16x64xf32>
    %83 = arith.addf %80, %82 : vector<16x64xf32>
    %84 = arith.truncf %83 : vector<16x64xf32> to vector<16x64xbf16>
    %c0_81 = arith.constant 0 : index
    %c0_82 = arith.constant 0 : index
    %c0_83 = arith.constant 0 : index
    %85 = vector.load %arg17[%c0_81, %c0_82, %c0_83] : memref<3x16x16xbf16, #tpu.memory_space<vmem>>, vector<1x16x16xbf16>
    %86 = vector.shape_cast %85 : vector<1x16x16xbf16> to vector<16x16xbf16>
    %cst_84 = arith.constant dense<0.000000e+00> : vector<16x64xf32>
    %87 = tpu.matmul %86, %84, %cst_84 {dimension_numbers = #tpu.dot_dimension_numbers<[1], [0], [0], [1], [0, 0, 1, 1], [], []>} : vector<16x16xbf16>, vector<16x64xbf16>, vector<16x64xf32> -> vector<16x64xf32>
    %c1_85 = arith.constant 1 : index
    %c0_86 = arith.constant 0 : index
    %c0_87 = arith.constant 0 : index
    %88 = vector.load %arg17[%c1_85, %c0_86, %c0_87] : memref<3x16x16xbf16, #tpu.memory_space<vmem>>, vector<1x16x16xbf16>
    %89 = vector.shape_cast %88 : vector<1x16x16xbf16> to vector<16x16xbf16>
    %cst_88 = arith.constant dense<0.000000e+00> : vector<16x64xf32>
    %90 = tpu.matmul %89, %84, %cst_88 {dimension_numbers = #tpu.dot_dimension_numbers<[1], [0], [0], [1], [0, 0, 1, 1], [], []>} : vector<16x16xbf16>, vector<16x64xbf16>, vector<16x64xf32> -> vector<16x64xf32>
    %c2_89 = arith.constant 2 : index
    %c0_90 = arith.constant 0 : index
    %c0_91 = arith.constant 0 : index
    %91 = vector.load %arg17[%c2_89, %c0_90, %c0_91] : memref<3x16x16xbf16, #tpu.memory_space<vmem>>, vector<1x16x16xbf16>
    %92 = vector.shape_cast %91 : vector<1x16x16xbf16> to vector<16x16xbf16>
    %cst_92 = arith.constant dense<0.000000e+00> : vector<16x64xf32>
    %93 = tpu.matmul %92, %84, %cst_92 {dimension_numbers = #tpu.dot_dimension_numbers<[1], [0], [0], [1], [0, 0, 1, 1], [], []>} : vector<16x16xbf16>, vector<16x64xbf16>, vector<16x64xf32> -> vector<16x64xf32>
    %94 = tpu.concatenate %87, %90, %93 in 1 : vector<16x64xf32>, vector<16x64xf32>, vector<16x64xf32> -> vector<16x192xf32>
    %c0_93 = arith.constant 0 : index
    %c0_94 = arith.constant 0 : index
    %95 = vector.load %arg18[%c0_93, %c0_94] : memref<192x64xbf16, #tpu.memory_space<vmem>>, vector<192x64xbf16>
    %96 = arith.truncf %94 : vector<16x192xf32> to vector<16x192xbf16>
    %cst_95 = arith.constant dense<0.000000e+00> : vector<16x64xf32>
    %97 = tpu.matmul %96, %95, %cst_95 {dimension_numbers = #tpu.dot_dimension_numbers<[1], [0], [0], [1], [0, 0, 1, 1], [], []>} : vector<16x192xbf16>, vector<192x64xbf16>, vector<16x64xf32> -> vector<16x64xf32>
    %c0_96 = arith.constant 0 : index
    %c0_97 = arith.constant 0 : index
    %c0_98 = arith.constant 0 : index
    %98 = vector.load %arg19[%c0_96, %c0_97, %c0_98] : memref<1x16x64xf32, #tpu.memory_space<vmem>>, vector<1x16x64xf32>
    %99 = vector.shape_cast %98 : vector<1x16x64xf32> to vector<16x64xf32>
    %100 = vector.shape_cast %97 : vector<16x64xf32> to vector<1x16x64xf32>
    tpu.vector_store %arg19[%c0_96, %c0_97, %c0_98], %100 {strides = array<i32>} : memref<1x16x64xf32, #tpu.memory_space<vmem>>, vector<1x16x64xf32>,
    return
  }
  func.func @transform_0(%arg0: i32) -> (i32, i32, i32) {
    %c0_i32 = arith.constant 0 : i32
    %c0_i32_0 = arith.constant 0 : i32
    %c0_i32_1 = arith.constant 0 : i32
    return %arg0, %c0_i32, %c0_i32_0 : i32, i32, i32
  }
  func.func @transform_1(%arg0: i32) -> (i32, i32, i32) {
    %c0_i32 = arith.constant 0 : i32
    %c0_i32_0 = arith.constant 0 : i32
    %c0_i32_1 = arith.constant 0 : i32
    return %arg0, %c0_i32, %c0_i32_0 : i32, i32, i32
  }
  func.func @transform_2(%arg0: i32) -> (i32, i32, i32) {
    %c0_i32 = arith.constant 0 : i32
    %c0_i32_0 = arith.constant 0 : i32
    %c0_i32_1 = arith.constant 0 : i32
    %c0_i32_2 = arith.constant 0 : i32
    return %c0_i32, %c0_i32_0, %c0_i32_1 : i32, i32, i32
  }
  func.func @transform_3(%arg0: i32) -> (i32, i32) {
    %c0_i32 = arith.constant 0 : i32
    %c0_i32_0 = arith.constant 0 : i32
    %c0_i32_1 = arith.constant 0 : i32
    return %c0_i32, %c0_i32_0 : i32, i32
  }
  func.func @transform_4(%arg0: i32) -> (i32, i32) {
    %c0_i32 = arith.constant 0 : i32
    %c0_i32_0 = arith.constant 0 : i32
    %c0_i32_1 = arith.constant 0 : i32
    return %c0_i32, %c0_i32_0 : i32, i32
  }
  func.func @transform_5(%arg0: i32) -> (i32, i32) {
    %c0_i32 = arith.constant 0 : i32
    %c0_i32_0 = arith.constant 0 : i32
    %c0_i32_1 = arith.constant 0 : i32
    return %c0_i32, %c0_i32_0 : i32, i32
  }
  func.func @transform_6(%arg0: i32) -> (i32, i32, i32) {
    %c0_i32 = arith.constant 0 : i32
    %c0_i32_0 = arith.constant 0 : i32
    %c0_i32_1 = arith.constant 0 : i32
    %c0_i32_2 = arith.constant 0 : i32
    return %c0_i32, %c0_i32_0, %c0_i32_1 : i32, i32, i32
  }
  func.func @transform_7(%arg0: i32) -> (i32, i32) {
    %c0_i32 = arith.constant 0 : i32
    %c0_i32_0 = arith.constant 0 : i32
    %c0_i32_1 = arith.constant 0 : i32
    return %c0_i32, %c0_i32_0 : i32, i32
  }
  func.func @transform_8(%arg0: i32) -> (i32, i32) {
    %c0_i32 = arith.constant 0 : i32
    %c0_i32_0 = arith.constant 0 : i32
    %c0_i32_1 = arith.constant 0 : i32
    return %c0_i32, %c0_i32_0 : i32, i32
  }
  func.func @transform_9(%arg0: i32) -> (i32, i32) {
    %c0_i32 = arith.constant 0 : i32
    %c0_i32_0 = arith.constant 0 : i32
    %c0_i32_1 = arith.constant 0 : i32
    return %c0_i32, %c0_i32_0 : i32, i32
  }
  func.func @transform_10(%arg0: i32) -> (i32, i32, i32) {
    %c0_i32 = arith.constant 0 : i32
    %c0_i32_0 = arith.constant 0 : i32
    %c0_i32_1 = arith.constant 0 : i32
    %c0_i32_2 = arith.constant 0 : i32
    return %c0_i32, %c0_i32_0, %c0_i32_1 : i32, i32, i32
  }
  func.func @transform_11(%arg0: i32) -> (i32, i32) {
    %c0_i32 = arith.constant 0 : i32
    %c0_i32_0 = arith.constant 0 : i32
    %c0_i32_1 = arith.constant 0 : i32
    return %c0_i32, %c0_i32_0 : i32, i32
  }
  func.func @transform_12(%arg0: i32) -> (i32, i32) {
    %c0_i32 = arith.constant 0 : i32
    %c0_i32_0 = arith.constant 0 : i32
    %c0_i32_1 = arith.constant 0 : i32
    return %c0_i32, %c0_i32_0 : i32, i32
  }
  func.func @transform_13(%arg0: i32) -> (i32, i32) {
    %c0_i32 = arith.constant 0 : i32
    %c0_i32_0 = arith.constant 0 : i32
    %c0_i32_1 = arith.constant 0 : i32
    return %c0_i32, %c0_i32_0 : i32, i32
  }
  func.func @transform_14(%arg0: i32) -> (i32, i32, i32) {
    %c0_i32 = arith.constant 0 : i32
    %c0_i32_0 = arith.constant 0 : i32
    %c0_i32_1 = arith.constant 0 : i32
    %c0_i32_2 = arith.constant 0 : i32
    return %c0_i32, %c0_i32_0, %c0_i32_1 : i32, i32, i32
  }
  func.func @transform_15(%arg0: i32) -> (i32, i32) {
    %c0_i32 = arith.constant 0 : i32
    %c0_i32_0 = arith.constant 0 : i32
    %c0_i32_1 = arith.constant 0 : i32
    return %c0_i32, %c0_i32_0 : i32, i32
  }
  func.func @transform_16(%arg0: i32) -> (i32, i32, i32) {
    %c0_i32 = arith.constant 0 : i32
    %c0_i32_0 = arith.constant 0 : i32
    %c0_i32_1 = arith.constant 0 : i32
    %c0_i32_2 = arith.constant 0 : i32
    return %c0_i32, %c0_i32_0, %c0_i32_1 : i32, i32, i32
  }
  func.func @transform_17(%arg0: i32) -> (i32, i32) {
    %c0_i32 = arith.constant 0 : i32
    %c0_i32_0 = arith.constant 0 : i32
    %c0_i32_1 = arith.constant 0 : i32
    return %c0_i32, %c0_i32_0 : i32, i32
  }
  func.func @transform_18(%arg0: i32) -> (i32, i32, i32) {
    %c0_i32 = arith.constant 0 : i32
    %c0_i32_0 = arith.constant 0 : i32
    %c0_i32_1 = arith.constant 0 : i32
    return %arg0, %c0_i32, %c0_i32_0 : i32, i32, i32
  }
}

</mosaic_0001>

<bundles_post_ra>
// kernel: tpu_custom_call.1
= control target key start
LH: loop header
LB: loop body
LE: loop exit
PB: predicated region body
PF: predicated region fallthrough
CT: control target
= control target key end

     0   :  { %s2628_s0 = inlined_call_operand.vmem [shape: f32[2,16,64], index: 0, kind: input, shape index: {}]   ;;  %s2629_s1 = inlined_call_operand.vmem [shape: f32[2,16,64], index: 1, kind: input, shape index: {}]   ;;  %s2630_s2 = inlined_call_operand.vmem [shape: bf16[3,8,16], index: 2, kind: input, shape index: {}]   ;;  %s2631_s3 = inlined_call_operand.vmem [shape: bf16[192,32], index: 3, kind: input, shape index: {}]   ;;  %s2632_s4 = inlined_call_operand.vmem [shape: bf16[16,8], index: 4, kind: input, shape index: {}]   ;;  %s2633_s5 = inlined_call_operand.vmem [shape: bf16[32,64], index: 5, kind: input, shape index: {}]   ;;  %s2634_s6 = inlined_call_operand.vmem [shape: bf16[3,4,8], index: 6, kind: input, shape index: {}]   ;;  %s2635_s7 = inlined_call_operand.vmem [shape: bf16[96,16], index: 7, kind: input, shape index: {}]   ;;  %s2636_s8 = inlined_call_operand.vmem [shape: bf16[16,4], index: 8, kind: input, shape index: {}]   ;;  %s2637_s9 = inlined_call_operand.vmem [shape: bf16[16,64], index: 9, kind: input, shape index: {}]   ;;  %s2638_s10 = inlined_call_operand.vmem [shape: bf16[3,2,4], index: 10, kind: input, shape index: {}]   ;;  %s2639_s11 = inlined_call_operand.vmem [shape: bf16[48,8], index: 11, kind: input, shape index: {}]   ;;  %s2640_s12 = inlined_call_operand.vmem [shape: bf16[16,2], index: 12, kind: input, shape index: {}]   ;;  %s2641_s13 = inlined_call_operand.vmem [shape: bf16[8,64], index: 13, kind: input, shape index: {}]   ;;  %s2642_s14 = inlined_call_operand.vmem [shape: bf16[3,16,16], index: 14, kind: input, shape index: {}]   ;;  %s2643_s15 = inlined_call_operand.vmem [shape: bf16[192,64], index: 15, kind: input, shape index: {}]   ;;  %s2644_s16 = inlined_call_operand.vmem [shape: bf16[3,16,16], index: 16, kind: input, shape index: {}]   ;;  %s2645_s17 = inlined_call_operand.vmem [shape: bf16[192,64], index: 17, kind: input, shape index: {}]   ;;  %s2646_s18 = inlined_call_operand.hbm [shape: f32[2,16,64], index: 18, kind: output, shape index: {}]  }
   0x1   :  { %2657 = sst [smem:[#allocation10_spill]] %s2628_s0 }
   0x2   :  { %2658 = sst [smem:[#allocation11_spill]] %s2629_s1 }
   0x3   :  { %2659 = sst [smem:[#allocation12_spill]] %s2630_s2 }
   0x4   :  { %2660 = sst [smem:[#allocation13_spill]] %s2631_s3 }
   0x5   :  { %2661 = sst [smem:[#allocation14_spill]] %s2632_s4 }
   0x6   :  { %23 = vsyncpa [#allocation3], 0 }
   0x7   :  { %25 = vsyncpa [#allocation3 + $0x1], 0  ;;  %s2282_s27 = smov 0   ;;  %s2284_s28 = smov 0  }
   0x8   :  { %s2286_s29 = smov 0   ;;  %s2288_s30 = smov 0  }
   0x9 LB: > { %2662 = sst [smem:[#allocation5_spill]] %s2168_s27  ;;  %s2303_s0 = sadd.s32 4294967295, %s2180_s30   ;;  %s2180_s30 = sphi %s2288_s30, %s2678_s30   ;;  %s2176_s29 = sphi %s2286_s29, %s2680_s29   ;;  %s2172_s28 = sphi %s2284_s28, %s2682_s28   ;;  %s2168_s27 = sphi %s2282_s27, %s2681_s27  }
   0xa   : > { %2663 = sst [smem:[#allocation6_spill]] %s2176_s29  ;;  %s1722_s19 = sadd.s32 4294967294, %s2180_s30  }
   0xb   : > { %s2307_s1 = sadd.s32 1, %s2180_s30   ;;  %s426_s20 = sadd.s32 1, %s2176_s29 }
   0xc   : > { %2664 = sst [smem:[#allocation7_spill]] %s2307_s1  ;;  %s423_s21 = ssub.s32 %s2180_s30, %s2307_s1 }
   0xd   : > { %p436_p0 = scmp.ne.s32.totalorder %s2176_s29, %s2172_s28  ;;  %p424_p1 = scmp.eq.s32.totalorder %s423_s21, 0 }
   0xe   : > { %p437_p2 = scmp.eq.s32.totalorder %s2303_s0, 1  ;;  %p442_p3 = scmp.ne.s32.totalorder %s2172_s28, %s2168_s27 }
   0xf   : > { %p443_p4 = scmp.eq.s32.totalorder %s1722_s19, 1  ;;  %p1725_p7 = scmp.ge.s32.totalorder %s2180_s30, 1 }
  0x10   : > { %s2318_s22 = scalar_select %p424_p1, %s2176_s29, %s426_s20  }
  0x11   : > { %p2320_p5 = por %p437_p2, %p436_p0  ;;  %p2324_p6 = por %p443_p4, %p442_p3 }
  0x12   : > { %2665 = sst [smem:[#allocation8_spill]] %s2318_s22  ;;  %p525_p8 = scmp.lt.s32.totalorder %s2180_s30, 3 }
  0x13   : > { %s2667_s23 = scalar_select %p2324_p6, 1, 0 }
  0x14   : > { %p526_p9 = pnand %p1725_p7, %p525_p8 }
  0x15   : > { %2668 = sst [smem:[#allocation9_spill]] %s2667_s23  ;;  %p584_p10 = scmp.lt.s32.totalorder (!%p526_p9), %s2303_s0, 1 }
  0x16   : > { %529 = sbr.rel (%p526_p9) target bundleno = 2545 (0x9f1), region = 92  ;;  %s2669_s20 = sld [smem:[#allocation10_spill]] (!%p526_p9) }
  0x17   : > { %s2670_s1 = sld [smem:[#allocation12_spill]] (!%p526_p9)  ;;  %s2655_s29 = smov (!%p526_p9), 64  }
  0x18   : > { %s2671_s3 = sld [smem:[#allocation13_spill]] (!%p526_p9)  ;;  %s2184_s27 = smov (!%p526_p9), 16  }
  0x19   : > { %s2672_s4 = sld [smem:[#allocation14_spill]] (!%p526_p9)  ;;  %s2673_s19 = smov (!%p526_p9), 64  }
  0x1a   : > { %s581_s23 = sand.u32 (!%p526_p9), 1, %s2172_s28  }
  0x1b   : > { %s2332_s24 = scalar_select %p584_p10, %s2303_s0, 1  ;;  %vm599_vm0 = vcmask 130048   ;;  %vm656_vm1 = vcmask 523264   ;;  %v2020_v30 = vld [vmem:[%s2633_s5 + $0x8] sm:$0xff]  ;;  %v2019_v31 = vld [vmem:[%s2633_s5] sm:$0xff]  ;;  %vm797_vm2 = vcmask 1043456  }
  0x1c   : > { %vm793_vm3 = vcmask 64512   ;;  %v1800_v38 = vld [vmem:[%s2634_s6 + $0x2] sm:$0x3]  ;;  %v852_v39 = vld [vmem:[%s2634_s6] sm:$0x3]  ;;  %vm832_vm4 = vcmask 261120  }
  0x1d   : > { %s2653_s25 = sshll.u32 %s2332_s24, 4  ;;  %v1732_v3 = vld [vmem:[%s2670_s1 + $0x4] sm:$0xf]  ;;  %v598_v4 = vld [vmem:[%s2670_s1] sm:$0xf]  ;;  %v2026_v46 = vld [vmem:[%s2635_s7 + $0x28] sm:$0xff] }
  0x1e   : > { %s588_s21 = scalar_lea.vmem %s2669_s20, %s2653_s25  ;;  %v1734_v5 = vld [vmem:[%s2670_s1 + $0x8] sm:$0xf]  ;;  %v2013_v6 = vld [vmem:[%s2671_s3 + $0x38] sm:$0xff]  ;;  %v2012_v8 = vld [vmem:[%s2671_s3 + $0x30] sm:$0xff]  ;;  %s2183_s1 = smov 32   ;;  %vm964_vm5 = vcmask 785408  }
  0x1f   : > { %v2340_v0 = vld [vmem:[%s588_s21] sm:$0xff]  ;;  %v2342_v1 = vld [vmem:[%s588_s21 + $0x8] sm:$0xff]  ;;  %v2017_v7 = vld [vmem:[%s2671_s3 + $0x58] sm:$0xff]  ;;  %759 = vmatpush.bf16.msra.mxu3 %v2013_v6  ;;  %vm993_vm6 = vcmask 1041408   ;;  %vm989_vm7 = vcmask 31744   ;;  %vm1127_vm8 = vcmask 392192  }
  0x20   : > { %v597_v2 = vpack.c.bf16 %v2342_v1, %v2340_v0  ;;  %v2016_v9 = vld [vmem:[%s2671_s3 + $0x50] sm:$0xff]  ;;  %v2011_v10 = vld [vmem:[%s2671_s3 + $0x28] sm:$0xff]  ;;  %v2010_v12 = vld [vmem:[%s2671_s3 + $0x20] sm:$0xff]  ;;  %vm1156_vm9 = vcmask 1040384   ;;  %vm1152_vm10 = vcmask 15360   ;;  %s2674_s21 = sshll.u32 %s2332_s24, 4 }
  0x21   : > { %v2015_v11 = vld [vmem:[%s2671_s3 + $0x48] sm:$0xff]  ;;  %v2014_v13 = vld [vmem:[%s2671_s3 + $0x40] sm:$0xff]  ;;  %v2009_v14 = vld [vmem:[%s2671_s3 + $0x18] sm:$0xff]  ;;  %s1726_s26 = sshll.u32 %s581_s23, 4 }
  0x22   : > { %628 = vmatpush.bf16.msra.mxu1 %v597_v2  ;;  %610 = vmatpush.bf16.msra.mxu0 %v597_v2  ;;  %v2008_v15 = vld [vmem:[%s2671_s3 + $0x10] sm:$0xff]  ;;  %v2007_v16 = vld [vmem:[%s2671_s3 + $0x8] sm:$0xff]  ;;  %v2006_v24 = vld [vmem:[%s2671_s3] sm:$0xff]  ;;  %s583_s25 = scalar_lea.vmem [#allocation2], %s1726_s26 }
  0x23   : > { %646 = vmatpush.bf16.msra.mxu2 %v597_v2  ;;  %760 = vmatpush.bf16.msra.mxu3 %v2012_v8  ;;  %v2018_v36 = vld [vmem:[%s2672_s4] sm:$0xff]  ;;  %v2024_v49 = vld [vmem:[%s2635_s7 + $0x18] sm:$0xff]  ;;  %v2023_v52 = vld [vmem:[%s2635_s7 + $0x10] sm:$0xff]  ;;  %s1645_s22 = sshll.u32 %s583_s25, 4  ;;  %s1646_s22 = int_to_ptr.vmem [resolvable:$true] %s1645_s22 }
  0x24   : > { %v1802_v43 = vld [vmem:[%s2634_s6 + $0x4] sm:$0x3]  ;;  %v2022_v53 = vld [vmem:[%s2635_s7 + $0x8] sm:$0xff]  ;;  %v1039_v8 = vld [vmem:[%s2638_s10] sm:$0x1] }
  0x25   : > { %1733 = vmatmul.msk.bf16.vlgmr.msra.gmra.mxu1 %vm599_vm0, %v1732_v3  ;;  %1731 = vmatmul.msk.bf16.vlgmr.msra.gmra.mxu0 %vm599_vm0, %v598_v4  ;;  %v2025_v48 = vld [vmem:[%s2635_s7 + $0x20] sm:$0xff] }
  0x26   : > { %1735 = vmatmul.msk.bf16.vlgmr.msra.gmra.mxu2 %vm599_vm0, %v1734_v5  ;;  %776 = vmatpush.bf16.msrb.mxu0 %v2017_v7  ;;  %v2021_v57 = vld [vmem:[%s2635_s7] sm:$0xff] }
  0x27   : > { %761 = vmatpush.bf16.msra.mxu3 %v2011_v10  ;;  %842 = vmatpush.bf16.msrb.mxu2 %v2020_v30  ;;  %v2028_v63 = vld [vmem:[%s2637_s9] sm:$0xff] }
  0x28   : > { %v2027_v5 = vld [vmem:[%s2636_s8] sm:$0xff] }
  0x29   : > { %v1840_v7 = vld [vmem:[%s2638_s10 + $0x1] sm:$0x1] }
  0x2a   : > { %777 = vmatpush.bf16.msrb.mxu0 %v2016_v9 }
  0x2b   : > { %762 = vmatpush.bf16.msra.mxu3 %v2010_v12  ;;  %843 = vmatpush.bf16.msrb.mxu2 %v2019_v31 }
  0x2e   : > { %778 = vmatpush.bf16.msrb.mxu0 %v2015_v11 }
  0x2f   : > { %763 = vmatpush.bf16.msra.mxu3 %v2009_v14 }
  0x32   : > { %779 = vmatpush.bf16.msrb.mxu0 %v2014_v13  ;;  %v1842_v13 = vld [vmem:[%s2638_s10 + $0x2] sm:$0x1] }
  0x33   : > { %764 = vmatpush.bf16.msra.mxu3 %v2008_v15 }
  0x37   : > { %765 = vmatpush.bf16.msra.mxu3 %v2007_v16  ;;  %v2031_v16 = vld [vmem:[%s2639_s11 + $0x10] sm:$0xff] }
  0x3b   : > { %766 = vmatpush.bf16.msra.mxu3 %v2006_v24 }
  0x3f   : > { %970 = vmatpush.bf16.msrb.mxu3 %v2026_v46 }
  0x43   : > { %971 = vmatpush.bf16.msrb.mxu3 %v2025_v48  ;;  %v2034_v48 = vld [vmem:[%s2642_s14 + $0x8] sm:$0xff] }
  0x47   : > { %972 = vmatpush.bf16.msrb.mxu3 %v2024_v49  ;;  %v2033_v49 = vld [vmem:[%s2642_s14] sm:$0xff] }
  0x4b   : > { %973 = vmatpush.bf16.msrb.mxu3 %v2023_v52  ;;  %v2047_v52 = vld [vmem:[%s2643_s15 + $0x58] sm:$0xff] }
  0x4f   : > { %974 = vmatpush.bf16.msrb.mxu3 %v2022_v53  ;;  %v2042_v53 = vld [vmem:[%s2643_s15 + $0x30] sm:$0xff] }
  0x53   : > { %975 = vmatpush.bf16.msrb.mxu3 %v2021_v57  ;;  %v2040_v57 = vld [vmem:[%s2643_s15 + $0x20] sm:$0xff] }
  0xa2   : > { %v630_v17 = vpop.f32.mrf.mxu1  ;;  %v612_v18 = vpop.f32.mrf.mxu0 }
  0xa3   : > { %653 = vrot.lane.b32.xlu0 %v630_v17, %s2655_s29  ;;  %v2030_v17 = vld [vmem:[%s2639_s11 + $0x8] sm:$0xff] }
  0xa9   : > { %v648_v19 = vpop.f32.mrf.mxu2 }
  0xaa   : > { %v632_v20 = vpop.f32.mrf.mxu1  ;;  %v614_v21 = vpop.f32.mrf.mxu0  ;;  %v683_v23 = vpack.c.bf16 %v648_v19, %v648_v19 }
  0xac   : > { %1784 = vmatmul.msk.bf16.vlgmr.msrb.gmra.mxu0 %vm656_vm1, %v683_v23 }
  0xb1   : > { %v650_v22 = vpop.f32.mrf.mxu2 }
 0x115   : > { %v654_v25 = vpop.permute.xlu0 %653 }
 0x116   : > { %v657_v26 = vsel %vm656_vm1, %v612_v18, %v654_v25 }
 0x117   : > { %v682_v27 = vpack.c.bf16 %v657_v26, %v657_v26 }
 0x119   : > { %767 = vmatmul.bf16.vlgmr.msra.gmra.mxu3 %v682_v27  ;;  %v2029_v27 = vld [vmem:[%s2639_s11] sm:$0xff] }
 0x129   : > { %v781_v28 = vpop.f32.mrf.mxu0 }
 0x131   : > { %v783_v29 = vpop.f32.mrf.mxu0 }
 0x19c   : > { %v768_v32 = vpop.f32.mrf.mxu3 }
 0x19d   : > { %v782_v33 = vadd.f32 %v781_v28, %v768_v32 }
 0x19f   : > { %v787_v34 = vpack.c.bf16 %v782_v33, %v782_v33 }
 0x1a1   : > { %v799_v35 = vsel %vm797_vm2, %v787_v34, 0  ;;  %v2032_v34 = vld [vmem:[%s2640_s12] sm:$0xff] }
 0x1a2   : > { %808 = vmatpush.bf16.msrb.mxu1 %v799_v35  ;;  %863 = vmatpush.bf16.msra.mxu0 %v799_v35 }
 0x1a3   : > { %899 = vmatpush.bf16.msra.mxu2 %v799_v35 }
 0x1a4   : > { %v770_v37 = vpop.f32.mrf.mxu3 }
 0x1a5   : > { %1789 = vmatmul.msk.bf16.vlgmr.msrb.gmra.mxu1 %vm793_vm3, %v2018_v36  ;;  %1799 = vmatmul.msk.bf16.vlgmr.msra.gmra.mxu0 %vm793_vm3, %v852_v39  ;;  %v1174_v36 = vld [vmem:[%s2641_s13] sm:$0xf] }
 0x1a6   : > { %881 = vmatpush.bf16.msra.mxu1 %v799_v35  ;;  %v1180_v37 = vsel %vm797_vm2, %v1174_v36, 0 }
 0x1aa   : > { %1030 = vmatpush.bf16.msrb.mxu1 %v2028_v63  ;;  %v2037_v63 = vld [vmem:[%s2643_s15 + $0x8] sm:$0xff] }
 0x1b5   : > { %1801 = vmatmul.msk.bf16.vlgmr.msra.gmra.mxu1 %vm793_vm3, %v1800_v38 }
 0x222   : > { %v810_v40 = vpop.f32.mrf.mxu1  ;;  %v865_v47 = vpop.f32.mrf.mxu0 }
 0x22a   : > { %v812_v41 = vpop.f32.mrf.mxu1  ;;  %v867_v51 = vpop.f32.mrf.mxu0 }
 0x22b   : > { %v819_v42 = vpack.c.bf16 %v812_v41, %v810_v40  ;;  %v2043_v51 = vld [vmem:[%s2643_s15 + $0x38] sm:$0xff] }
 0x22d   : > { %1798 = vmatmul.msk.bf16.vlgmr.msrb.gmra.mxu2 %vm832_vm4, %v819_v42 }
 0x232   : > { %v883_v44 = vpop.f32.mrf.mxu1 }
 0x233   : > { %906 = vrot.lane.b32.xlu0 %v883_v44, %s2183_s1 }
 0x23a   : > { %v885_v45 = vpop.f32.mrf.mxu1 }
 0x23d   : > { %1803 = vmatmul.msk.bf16.vlgmr.msra.gmra.mxu2 %vm793_vm3, %v1802_v43 }
 0x2a5   : > { %v907_v58 = vpop.permute.xlu0 %906 }
 0x2a6   : > { %v913_v59 = vsel %vm832_vm4, %v865_v47, %v907_v58  ;;  %v2044_v58 = vld [vmem:[%s2643_s15 + $0x40] sm:$0xff] }
 0x2b0   : > { %v845_v50 = vpop.f32.mrf.mxu2 }
 0x2b1   : > { %v850_v18 = vadd.f32 %v845_v50, %v2340_v0  ;;  %v2035_v50 = vld [vmem:[%s2642_s14 + $0x10] sm:$0xff] }
 0x2b8   : > { %v847_v54 = vpop.f32.mrf.mxu2 }
 0x2b9   : > { %v851_v22 = vadd.f32 %v847_v54, %v2342_v1  ;;  %v2046_v54 = vld [vmem:[%s2643_s15 + $0x50] sm:$0xff] }
 0x2c0   : > { %v901_v55 = vpop.f32.mrf.mxu2 }
 0x2c1   : > { %910 = vrot.lane.b32.xlu1 %v901_v55, %s2655_s29  ;;  %v2041_v55 = vld [vmem:[%s2643_s15 + $0x28] sm:$0xff]  ;;  %s2675_s29 = sld [smem:[#allocation11_spill]] }
 0x2c8   : > { %v903_v56 = vpop.f32.mrf.mxu2 }
 0x2c9   : > { %v2045_v56 = vld [vmem:[%s2643_s15 + $0x48] sm:$0xff] }
 0x333   : > { %v911_v60 = vpop.permute.xlu1 %910 }
 0x334   : > { %v914_v61 = vsel %vm656_vm1, %v913_v59, %v911_v60  ;;  %v2039_v59 = vld [vmem:[%s2643_s15 + $0x18] sm:$0xff]  ;;  %v2038_v60 = vld [vmem:[%s2643_s15 + $0x10] sm:$0xff] }
 0x335   : > { %v927_v62 = vpack.c.bf16 %v914_v61, %v914_v61 }
 0x337   : > { %1828 = vmatmul.msk.bf16.vlgmr.msrb.gmra.mxu3 %vm964_vm5, %v927_v62 }
 0x3ba   : > { %v977_v2 = vpop.f32.mrf.mxu3 }
 0x3bb   : > { %v983_v3 = vpack.c.bf16 %v977_v2, %v977_v2 }
 0x3bd   : > { %v995_v4 = vsel %vm993_vm6, %v983_v3, 0 }
 0x3be   : > { %1004 = vmatpush.bf16.msrb.mxu0 %v995_v4  ;;  %1050 = vmatpush.bf16.msrb.mxu2 %v995_v4 }
 0x3bf   : > { %1086 = vmatpush.bf16.msra.mxu1 %v995_v4 }
 0x3c1   : > { %1833 = vmatmul.msk.bf16.vlgmr.msrb.gmra.mxu0 %vm989_vm7, %v2027_v5  ;;  %1839 = vmatmul.msk.bf16.vlgmr.msrb.gmra.mxu2 %vm989_vm7, %v1039_v8 }
 0x3c2   : > { %1068 = vmatpush.bf16.msra.mxu0 %v995_v4  ;;  %v979_v6 = vpop.f32.mrf.mxu3  ;;  %1136 = vmatpush.bf16.msra.mxu2 %v2031_v16 }
 0x3c3   : > { %v2036_v6 = vld [vmem:[%s2643_s15] sm:$0xff] }
 0x3c6   : > { %1137 = vmatpush.bf16.msra.mxu2 %v2030_v17  ;;  %1189 = vmatpush.bf16.msrb.mxu0 %v1180_v37  ;;  %v2053_v37 = vld [vmem:[%s2645_s17 + $0x10] sm:$0xff] }
 0x3ca   : > { %1138 = vmatpush.bf16.msra.mxu2 %v2029_v27  ;;  %v2048_v27 = vld [vmem:[%s2644_s16] sm:$0xff] }
 0x3d1   : > { %1841 = vmatmul.msk.bf16.vlgmr.msra.gmra.mxu0 %vm989_vm7, %v1840_v7 }
 0x3d2   : > { %1388 = vmatpush.bf16.msra.mxu0 %v2043_v51 }
 0x3d6   : > { %1389 = vmatpush.bf16.msra.mxu0 %v2042_v53 }
 0x3da   : > { %1390 = vmatpush.bf16.msra.mxu0 %v2041_v55 }
 0x3de   : > { %1391 = vmatpush.bf16.msra.mxu0 %v2040_v57 }
 0x3e2   : > { %1392 = vmatpush.bf16.msra.mxu0 %v2039_v59 }
 0x3e6   : > { %1393 = vmatpush.bf16.msra.mxu0 %v2038_v60 }
 0x3ea   : > { %1394 = vmatpush.bf16.msra.mxu0 %v2037_v63 }
 0x3ee   : > { %1395 = vmatpush.bf16.msra.mxu0 %v2036_v6 }
 0x43e   : > { %v1006_v9 = vpop.f32.mrf.mxu0 }
 0x444   : > { %v1052_v15 = vpop.f32.mrf.mxu2 }
 0x446   : > { %v1008_v10 = vpop.f32.mrf.mxu0 }
 0x447   : > { %v1013_v11 = vpack.c.bf16 %v1008_v10, %v1006_v9 }
 0x449   : > { %1838 = vmatmul.msk.bf16.vlgmr.msrb.gmra.mxu1 %vm599_vm0, %v1013_v11 }
 0x44c   : > { %v1054_v20 = vpop.f32.mrf.mxu2 }
 0x44e   : > { %v1070_v12 = vpop.f32.mrf.mxu0 }
 0x44f   : > { %1093 = vrot.lane.b32.xlu1 %v1070_v12, %s2184_s27 }
 0x456   : > { %v1072_v14 = vpop.f32.mrf.mxu0 }
 0x459   : > { %1843 = vmatmul.msk.bf16.vlgmr.msra.gmra.mxu1 %vm989_vm7, %v1842_v13 }
 0x4c1   : > { %v1094_v28 = vpop.permute.xlu1 %1093 }
 0x4c2   : > { %v1100_v29 = vsel %vm599_vm0, %v1052_v15, %v1094_v28  ;;  %v2050_v28 = vld [vmem:[%s2644_s16 + $0x10] sm:$0xff] }
 0x4c6   : > { %v1032_v19 = vpop.f32.mrf.mxu1 }
 0x4c7   : > { %v1037_v21 = vadd.f32 %v1032_v19, %v850_v18 }
 0x4ce   : > { %v1034_v23 = vpop.f32.mrf.mxu1 }
 0x4cf   : > { %v1038_v24 = vadd.f32 %v1034_v23, %v851_v22 }
 0x4d6   : > { %v1088_v25 = vpop.f32.mrf.mxu1 }
 0x4d7   : > { %1097 = vrot.lane.b32.xlu2 %v1088_v25, %s2183_s1  ;;  %s593_s1 = scalar_lea.vmem %s2675_s29, %s2674_s21  ;;  %s1633_s29 = scalar_lea.sflag [#allocation3], %s581_s23 }
 0x4d8   : > { %v1311_v17 = vld [vmem:[%s593_s1] sm:$0xff]  ;;  %v1312_v18 = vld [vmem:[%s593_s1 + $0x8] sm:$0xff] }
 0x4de   : > { %v1090_v26 = vpop.f32.mrf.mxu1 }
 0x4df   : > { %v2049_v26 = vld [vmem:[%s2644_s16 + $0x8] sm:$0xff] }
 0x531   : > { %v1098_v0 = vpop.permute.xlu2 %1097 }
 0x532   : > { %v1101_v30 = vsel %vm832_vm4, %v1100_v29, %v1098_v0  ;;  %v2058_v29 = vld [vmem:[%s2645_s17 + $0x38] sm:$0xff] }
 0x533   : > { %v1108_v31 = vpack.c.bf16 %v1101_v30, %v1101_v30  ;;  %v2062_v0 = vld [vmem:[%s2645_s17 + $0x58] sm:$0xff]  ;;  %v2057_v30 = vld [vmem:[%s2645_s17 + $0x30] sm:$0xff] }
 0x535   : > { %1856 = vmatmul.msk.bf16.vlgmr.msra.gmra.mxu2 %vm1127_vm8, %v1108_v31  ;;  %v2061_v31 = vld [vmem:[%s2645_s17 + $0x50] sm:$0xff] }
 0x5b8   : > { %v1140_v1 = vpop.f32.mrf.mxu2 }
 0x5b9   : > { %v1146_v32 = vpack.c.bf16 %v1140_v1, %v1140_v1  ;;  %v2056_v1 = vld [vmem:[%s2645_s17 + $0x28] sm:$0xff] }
 0x5bb   : > { %v1158_v33 = vsel %vm1156_vm9, %v1146_v32, 0  ;;  %v2060_v32 = vld [vmem:[%s2645_s17 + $0x48] sm:$0xff] }
 0x5bc   : > { %1167 = vmatpush.bf16.msra.mxu3 %v1158_v33  ;;  %v2055_v33 = vld [vmem:[%s2645_s17 + $0x20] sm:$0xff] }
 0x5bf   : > { %1861 = vmatmul.msk.bf16.vlgmr.msra.gmra.mxu3 %vm1152_vm10, %v2032_v34  ;;  %v2059_v34 = vld [vmem:[%s2645_s17 + $0x40] sm:$0xff] }
 0x5c0   : > { %v1142_v35 = vpop.f32.mrf.mxu2 }
 0x5c1   : > { %v2054_v35 = vld [vmem:[%s2645_s17 + $0x18] sm:$0xff] }
 0x642   : > { %v1169_v38 = vpop.f32.mrf.mxu3 }
 0x64a   : > { %v1171_v39 = vpop.f32.mrf.mxu3 }
 0x64b   : > { %v1175_v40 = vpack.c.bf16 %v1171_v39, %v1169_v38  ;;  %v2052_v39 = vld [vmem:[%s2645_s17 + $0x8] sm:$0xff] }
 0x64d   : > { %1862 = vmatmul.msk.bf16.vlgmr.msrb.gmra.mxu0 %vm793_vm3, %v1175_v40 }
 0x6ca   : > { %v1191_v41 = vpop.f32.mrf.mxu0 }
 0x6cb   : > { %v1196_v42 = vadd.f32 %v1191_v41, %v1037_v21 }
 0x6cd   : > { %v1198_v45 = vmax.f32 %v1196_v42, 0.0 }
 0x6d2   : > { %v1193_v43 = vpop.f32.mrf.mxu0 }
 0x6d3   : > { %v1197_v44 = vadd.f32 %v1193_v43, %v1038_v24 }
 0x6d5   : > { %v1199_v46 = vmax.f32 %v1197_v44, 0.0  ;;  %v2051_v44 = vld [vmem:[%s2645_s17] sm:$0xff] }
 0x6d7   : > { %v1200_v47 = vpack.c.bf16 %v1199_v46, %v1198_v45 }
 0x6d9   : > { %1218 = vmatpush.bf16.msrb.mxu1 %v1200_v47  ;;  %1243 = vmatpush.bf16.msrb.mxu2 %v1200_v47 }
 0x6da   : > { %1268 = vmatpush.bf16.msrb.mxu3 %v1200_v47 }
 0x6dc   : > { %1874 = vmatmul.msk.bf16.vlgmr.msrb.gmra.mxu2 %vm599_vm0, %v2034_v48  ;;  %1867 = vmatmul.msk.bf16.vlgmr.msrb.gmra.mxu1 %vm599_vm0, %v2033_v49 }
 0x6dd   : > { %1881 = vmatmul.msk.bf16.vlgmr.msrb.gmra.mxu3 %vm599_vm0, %v2035_v50  ;;  %1406 = vmatpush.bf16.msra.mxu1 %v2047_v52 }
 0x6e1   : > { %1407 = vmatpush.bf16.msra.mxu1 %v2046_v54 }
 0x6e5   : > { %1408 = vmatpush.bf16.msra.mxu1 %v2045_v56 }
 0x6e9   : > { %1409 = vmatpush.bf16.msra.mxu1 %v2044_v58 }
 0x759   : > { %v1220_v7 = vpop.f32.mrf.mxu1 }
 0x75f   : > { %v1245_v61 = vpop.f32.mrf.mxu2 }
 0x760   : > { %v1270_v62 = vpop.f32.mrf.mxu3 }
 0x761   : > { %v1222_v11 = vpop.f32.mrf.mxu1 }
 0x767   : > { %v1247_v2 = vpop.f32.mrf.mxu2 }
 0x768   : > { %v2108_v3 = vpack.i.bf16 %v1247_v2, %v1245_v61  ;;  %v1272_v4 = vpop.f32.mrf.mxu3 }
 0x769   : > { %v1310_v5 = vpack.c.bf16 %v1272_v4, %v1270_v62 }
 0x76a   : > { %2109 = vrot.lane.b32.xlu2 %v2108_v3, %s2673_s19 }
 0x76b   : > { %1930 = vmatmul.msk.bf16.vlgmr.msra.gmra.mxu1 %vm656_vm1, %v1310_v5 }
 0x7c4   : > { %v2110_v8 = vpop.permute.xlu2 %2109 }
 0x7c5   : > { %v2112_v9 = vunpack.i.h.bf16 %v2110_v8  ;;  %v2111_v10 = vunpack.i.l.bf16 %v2110_v8 }
 0x7c7   : > { %v1283_v12 = vsel %vm656_vm1, %v1220_v7, %v2111_v10  ;;  %v1284_v13 = vsel %vm656_vm1, %v1222_v11, %v2112_v9 }
 0x7c8   : > { %v1309_v14 = vpack.c.bf16 %v1284_v13, %v1283_v12 }
 0x7ca   : > { %1396 = vmatmul.bf16.vlgmr.msra.gmra.mxu0 %v1309_v14 }
 0x7e8   : > { %v1411_v15 = vpop.f32.mrf.mxu1 }
 0x7f0   : > { %v1413_v22 = vpop.f32.mrf.mxu1 }
 0x847   : > { %v1397_v16 = vpop.f32.mrf.mxu0 }
 0x848   : > { %v1398_v19 = vadd.f32 %v1397_v16, %v1311_v17 }
 0x84a   : > { %v1412_v23 = vadd.f32 %v1411_v15, %v1398_v19 }
 0x84f   : > { %v1399_v20 = vpop.f32.mrf.mxu0 }
 0x850   : > { %v1400_v21 = vadd.f32 %v1399_v20, %v1312_v18 }
 0x852   : > { %v1414_v24 = vadd.f32 %v1413_v22, %v1400_v21 }
 0x854   : > { %v1416_v25 = vpack.c.bf16 %v1414_v24, %v1412_v23 }
 0x856   : > { %1434 = vmatpush.bf16.msra.mxu2 %v1416_v25  ;;  %1459 = vmatpush.bf16.msra.mxu3 %v1416_v25 }
 0x857   : > { %1484 = vmatpush.bf16.msrb.mxu1 %v1416_v25 }
 0x859   : > { %1942 = vmatmul.msk.bf16.vlgmr.msra.gmra.mxu3 %vm599_vm0, %v2049_v26  ;;  %1935 = vmatmul.msk.bf16.vlgmr.msra.gmra.mxu2 %vm599_vm0, %v2048_v27 }
 0x85a   : > { %1949 = vmatmul.msk.bf16.vlgmr.msrb.gmra.mxu1 %vm599_vm0, %v2050_v28  ;;  %1602 = vmatpush.bf16.msrb.mxu2 %v2058_v29 }
 0x85b   : > { %1620 = vmatpush.bf16.msrb.mxu3 %v2062_v0 }
 0x85e   : > { %1603 = vmatpush.bf16.msrb.mxu2 %v2057_v30 }
 0x85f   : > { %1621 = vmatpush.bf16.msrb.mxu3 %v2061_v31 }
 0x862   : > { %1604 = vmatpush.bf16.msrb.mxu2 %v2056_v1 }
 0x863   : > { %1622 = vmatpush.bf16.msrb.mxu3 %v2060_v32 }
 0x866   : > { %1605 = vmatpush.bf16.msrb.mxu2 %v2055_v33 }
 0x867   : > { %1623 = vmatpush.bf16.msrb.mxu3 %v2059_v34 }
 0x86a   : > { %1606 = vmatpush.bf16.msrb.mxu2 %v2054_v35 }
 0x86e   : > { %1607 = vmatpush.bf16.msrb.mxu2 %v2053_v37 }
 0x872   : > { %1608 = vmatpush.bf16.msrb.mxu2 %v2052_v39 }
 0x876   : > { %1609 = vmatpush.bf16.msrb.mxu2 %v2051_v44 }
 0x8d7   : > { %v1486_v36 = vpop.f32.mrf.mxu1 }
 0x8dc   : > { %v1461_v38 = vpop.f32.mrf.mxu3  ;;  %v1436_v45 = vpop.f32.mrf.mxu2 }
 0x8df   : > { %v1488_v40 = vpop.f32.mrf.mxu1 }
 0x8e0   : > { %v1526_v41 = vpack.c.bf16 %v1488_v40, %v1486_v36 }
 0x8e2   : > { %1998 = vmatmul.msk.bf16.vlgmr.msrb.gmra.mxu3 %vm656_vm1, %v1526_v41 }
 0x8e4   : > { %v1463_v42 = vpop.f32.mrf.mxu3  ;;  %v1438_v49 = vpop.f32.mrf.mxu2 }
 0x8e5   : > { %v2113_v43 = vpack.i.bf16 %v1463_v42, %v1461_v38 }
 0x8e7   : > { %2114 = vrot.lane.b32.xlu0 %v2113_v43, %s2673_s19  ;;  %s2063_s19 = sshll.u32 %s2303_s0, 4 }
 0x8e8   : > { %s1644_s21 = scalar_lea.hbm %s2646_s18, %s2063_s19  ;;  %s2138_s19 = scalar_lea.hbm %s2646_s18, 32 }
 0x8e9   : > { %s1647_s27 = sshll.u32 %s1644_s21, 4  ;;  %s1648_s27 = int_to_ptr.hbm [resolvable:$true] %s1647_s27 }
 0x8ea   : > { %s2132_s0 = sshra.s32 %s1648_s27, 4  ;;  %s2133_s0 = int_to_ptr.hbm [resolvable:$true] %s2132_s0 }
 0x8eb   : > { %s2134_s1 = scalar_lea.hbm %s2133_s0, 16  ;;  %p2139_p0 = scmp.lt.s32.totalorder %s2133_s0, %s2646_s18 }
 0x8ec   : > { %p2135_p11 = scmp.ne.s32.totalorder %s2133_s0, %s2134_s1  ;;  %p2140_p1 = scmp.lt.s32.totalorder %s2138_s19, %s2134_s1 }
 0x8ee   : > { %p2136_p12 = pnand %p2135_p11, %p2320_p5  ;;  %p2141_p2 = por %p2140_p1, %p2139_p0 }
 0x8f0   : > { %p2137_p13 = pneg %p2136_p12 }
 0x8f2   : > { %p2142_p3 = pnand %p2141_p2, %p2137_p13 }
 0x959   : > { %v2115_v46 = vpop.permute.xlu0 %2114 }
 0x95a   : > { %v2117_v47 = vunpack.i.h.bf16 %v2115_v46  ;;  %v2116_v48 = vunpack.i.l.bf16 %v2115_v46 }
 0x95c   : > { %v1499_v50 = vsel %vm656_vm1, %v1436_v45, %v2116_v48  ;;  %v1500_v51 = vsel %vm656_vm1, %v1438_v49, %v2117_v47 }
 0x95d   : > { %v1525_v52 = vpack.c.bf16 %v1500_v51, %v1499_v50 }
 0x95f   : > { %1610 = vmatmul.bf16.vlgmr.msrb.gmra.mxu2 %v1525_v52 }
 0x965   : > { %v1625_v53 = vpop.f32.mrf.mxu3 }
 0x96d   : > { %v1627_v56 = vpop.f32.mrf.mxu3 }
 0x9e2   : > { %v1611_v54 = vpop.f32.mrf.mxu2 }
 0x9e3   : > { %v1626_v55 = vadd.f32 %v1625_v53, %v1611_v54 }
 0x9e5   : > { %1630 = vst.msk [vmem:[%s583_s25] sm:$0xff] %vm656_vm1, %v1626_v55 }
 0x9ea   : > { %v1613_v57 = vpop.f32.mrf.mxu2 }
 0x9eb   : > { %v1628_v58 = vadd.f32 %v1627_v56, %v1613_v57 }
 0x9ed   : > { %1631 = vst.msk [vmem:[%s583_s25 + $0x8] sm:$0xff] %vm656_vm1, %v1628_v58 }
 0x9ee   : > { %2145 = shalt.err (!%p2142_p3)
}
 0x9ef   : > { %s2185_s23 = smov 128   ;;  %s2186_s25 = smov 8  }
 0x9f0   : > { %2064 = dma.vmem_to_hbm [thread:$0]  (%p2320_p5), %s1646_s22, 256, %s1648_s27, %s1633_s29, %s2185_s23, %s2185_s23, %s2186_s25  }
 0x9f1 PF: > { %s2676_s3 = sld [smem:[#allocation5_spill]]  ;;  %p2070_p4 = scmp.ge.s32.totalorder %s2180_s30, 2 }
 0x9f3   : > { %p2067_p7 = pnand %p2070_p4, %p2324_p6 }
 0x9f5   : > { %p2068_p8 = pneg %p2067_p7 }
 0x9f7   : > { %s1662_s26 = sand.u32 1, %s2676_s3  }
 0x9f8   : > { %s1663_s20 = scalar_lea.sflag [#allocation3], %s1662_s26 }
 0x9f9   : > { %2163 = dma.done.wait (%p2068_p8), %s1663_s20, 256  }
 0x9fa   : > { %2165 = vsyncadd (%p2068_p8), %s1663_s20, 4294967040  ;;  %s2678_s30 = sld [smem:[#allocation7_spill]]  ;;  %s2681_s27 = smov %s2172_s28 }
 0x9fb   : > { %s2679_s0 = sld [smem:[#allocation6_spill]] }
 0x9fc   : > { %s2680_s29 = sld [smem:[#allocation8_spill]] }
 0xa00   : > { %p28_p9 = scmp.ge.s32.totalorder %s2678_s30, 4  }
 0xa01   : > { %s2682_s28 = smov %s2679_s0 }
 0xa02   :  { %30 = sbr.rel (!%p28_p9) target bundleno = 9 (0x9), region = 140 }
 0xa07   :  { %1669 = vsyncpa [#allocation3], 1 }
 0xa08   :  { %1671 = vsyncpa [#allocation3 + $0x1], 1 }

</bundles_post_ra>
